<compile_context>
chip_gen: v7x
topology: tpu7x:2x2x1
jax: 0.10.0
libtpu: 0.0.40
codegen_flags: <defaults>
</compile_context>

<pallas_src>
import functools

import numpy as np
import jax
import jax.numpy as jnp
from jax.experimental import pallas as pl
from jax.experimental.pallas import tpu as pltpu


_NEG_BIG = 1e30  # additive mask magnitude; exp underflows to exactly 0 in f32


def _round_up(a, b):
    return (a + b - 1) // b * b


def _head_proj(att):
    """(heads, out_ch) attention vector -> block-diagonal (heads*out_ch, heads)."""
    heads, out_ch = att.shape
    eye = jnp.eye(heads, dtype=jnp.float32)
    return (att[:, :, None] * eye[:, None, :]).reshape(heads * out_ch, heads)


# ---------------------------------------------------------------------------
# Stage 1: linear transform + attention logits, gridded over row blocks
# ---------------------------------------------------------------------------
def _gat_prep_kernel(x_ref, w_ref, asrc_ref, adst_ref,
                     h_ref, asrc_t_ref, adst_out_ref, *, c_total, h_pad):
    h = jnp.dot(x_ref[...], w_ref[...], preferred_element_type=jnp.float32)   # (TM, C)
    a_src = jnp.dot(h, asrc_ref[...], preferred_element_type=jnp.float32)     # (TM, H)
    a_dst = jnp.dot(h, adst_ref[...], preferred_element_type=jnp.float32)     # (TM, H)
    tm = h.shape[0]
    # h | ones | zero-pad  -> one lane-dense 128-wide store; the ones column
    # later yields the softmax denominator from a free MXU output lane.
    pieces = [h, jnp.ones((tm, 1), jnp.float32)]
    if h_pad > c_total + 1:
        pieces.append(jnp.zeros((tm, h_pad - c_total - 1), jnp.float32))
    h_ref[...] = jnp.concatenate(pieces, axis=1)
    asrc_t_ref[...] = a_src.T                       # column block of (H, N)
    adst_out_ref[...] = a_dst


def gat_prep(x, w, asrc_mat, adst_mat, *, tm, h_pad):
    n, f_in = x.shape
    c_total = w.shape[1]
    heads = asrc_mat.shape[1]
    assert n % tm == 0
    kern = functools.partial(_gat_prep_kernel, c_total=c_total, h_pad=h_pad)
    return pl.pallas_call(
        kern,
        out_shape=(jax.ShapeDtypeStruct((n, h_pad), jnp.float32),
                   jax.ShapeDtypeStruct((heads, n), jnp.float32),
                   jax.ShapeDtypeStruct((n, heads), jnp.float32)),
        grid=(n // tm,),
        in_specs=[
            pl.BlockSpec((tm, f_in), lambda i: (i, 0)),        # x row block
            pl.BlockSpec(w.shape, lambda i: (0, 0)),           # W resident
            pl.BlockSpec(asrc_mat.shape, lambda i: (0, 0)),    # att_src resident
            pl.BlockSpec(adst_mat.shape, lambda i: (0, 0)),    # att_dst resident
        ],
        out_specs=(
            pl.BlockSpec((tm, h_pad), lambda i: (i, 0)),       # h (ones col + pad)
            pl.BlockSpec((heads, tm), lambda i: (0, i)),       # a_src^T column block
            pl.BlockSpec((tm, heads), lambda i: (i, 0)),       # a_dst row block
        ),
        compiler_params=pltpu.CompilerParams(
            dimension_semantics=("parallel",)),
    )(x, w, asrc_mat, adst_mat)


# ---------------------------------------------------------------------------
# Stage 2: masked softmax attention + aggregation, gridded over row blocks
# ---------------------------------------------------------------------------
def _gat_attn_kernel(h_ref, asrc_t_ref, adst_ref, shift_ref, bias_ref, adj_ref,
                     out_ref, *, heads, out_ch, out_pad, apply_elu,
                     apply_log_softmax):
    ones_col = heads * out_ch
    # int8 {0,1} adjacency row block -> additive mask bias (0 on edge, -1e30 off),
    # hoisted out of the per-head loop; no per-head selects needed.
    mask_bias = (adj_ref[...].astype(jnp.float32) - 1.0) * jnp.float32(_NEG_BIG)

    pieces = []
    for hd in range(heads):                       # heads is small & static: unroll
        # e[i, j] = LeakyReLU(att_dst . Wx_i + att_src . Wx_j), slope 0.2
        e = adst_ref[:, hd:hd + 1] + asrc_t_ref[hd:hd + 1, :]           # (TM, N)
        e = jnp.maximum(e, 0.2 * e)                                     # LeakyReLU(0.2)
        # shift_i = LeakyReLU(a_dst_i + max_j a_src_j) upper-bounds every unmasked
        # logit (softmax shift-invariant) -> no per-row max reduce needed.
        e = e + (mask_bias - shift_ref[:, hd:hd + 1])
        p = jnp.exp(e)                                                  # masked -> exact 0
        # One matmul returns the aggregate AND the p row-sum (ones column in h).
        agg = jnp.dot(p, h_ref[...], preferred_element_type=jnp.float32)  # (TM, h_pad)
        denom = agg[:, ones_col:ones_col + 1]
        res = agg[:, hd * out_ch:(hd + 1) * out_ch] * pl.reciprocal(denom, approx=True)
        res = res + bias_ref[:, hd * out_ch:(hd + 1) * out_ch]
        if apply_elu:                                                   # F.elu, alpha=1
            res = jnp.where(res > 0.0, res, jnp.expm1(res))
        if apply_log_softmax:                                           # heads == 1 only
            z = res - jnp.max(res, axis=1, keepdims=True)
            res = z - jnp.log(jnp.sum(jnp.exp(z), axis=1, keepdims=True))
        pieces.append(res)

    c_out = heads * out_ch
    if out_pad > c_out:                           # keep padded lanes well-defined
        pieces.append(jnp.zeros((out_ref.shape[0], out_pad - c_out), jnp.float32))
    out_ref[...] = jnp.concatenate(pieces, axis=1)   # single lane-dense store


def _attn_vmem_limit(n, tm, heads, h_pad, out_pad):
    """Actual footprint estimate, capped at 48 MiB (v7x has 64 MiB physical)."""
    resident = 2 * (n * h_pad * 4 + heads * n * 4)                  # h, a_src^T
    streamed = 2 * (tm * n + 2 * tm * heads * 4 + tm * out_pad * 4)  # adj/adst/shift/out dbuf
    temps = 4 * tm * n * 4                                           # e / p / mask_bias / slack
    need = resident + streamed + temps + (4 << 20)
    return int(min(max(need, 24 << 20), 48 << 20))


def gat_attention(h_aug, asrc_t, adst, shift, bias, adj, *, heads, out_ch, tm,
                  out_pad, apply_elu=False, apply_log_softmax=False):
    n, h_pad = h_aug.shape
    if apply_log_softmax:
        assert heads == 1, "log_softmax over concatenated heads not supported"
    assert n % tm == 0

    kern = functools.partial(
        _gat_attn_kernel, heads=heads, out_ch=out_ch, out_pad=out_pad,
        apply_elu=apply_elu, apply_log_softmax=apply_log_softmax)

    def full(arr):                                # full array, resident across grid
        return pl.BlockSpec(arr.shape, lambda i: tuple(0 for _ in arr.shape))

    return pl.pallas_call(
        kern,
        out_shape=jax.ShapeDtypeStruct((n, out_pad), jnp.float32),
        grid=(n // tm,),
        in_specs=[
            full(h_aug),                                   # (N, h_pad) resident
            full(asrc_t),                                  # (H, N)     resident
            pl.BlockSpec((tm, heads), lambda i: (i, 0)),   # a_dst row block
            pl.BlockSpec((tm, heads), lambda i: (i, 0)),   # shift row block
            full(bias),                                    # (1, H*C)
            pl.BlockSpec((tm, n), lambda i: (i, 0)),       # int8 adj row block
        ],
        out_specs=pl.BlockSpec((tm, out_pad), lambda i: (i, 0)),
        compiler_params=pltpu.CompilerParams(
            dimension_semantics=("parallel",),             # >=2 blocks -> both v7x TCs
            vmem_limit_bytes=_attn_vmem_limit(n, tm, heads, h_pad, out_pad)),
    )(h_aug, asrc_t, adst, shift, bias, adj)


# ---------------------------------------------------------------------------
# GATModel forward (eval mode)
# ---------------------------------------------------------------------------
def gat_model(x, adj, params, *, row_block=256):
    """x: (N, F_in) f32; adj: (N, N) {0,1}, adj[i, j]=1 iff edge j->i, self-loops in.

    row_block: max row tile; 256 is safe on v7x (64 MiB VMEM), use 512 on v5e/v6e.
    """
    n = x.shape[0]
    heads1, hid = 8, 8
    nc = params["num_classes"]

    # Pad N to a multiple of 256: adj/e/p lane dims are 128-dense and the grid
    # always has >= 2 steps.  Padded rows get a self-loop so their softmax row
    # has >= 1 unmasked entry; padded columns stay masked for real rows.
    n_pad = _round_up(max(n, 256), 256)
    tm = 128
    for cand in (512, 256, 128):
        if cand <= row_block and n_pad % cand == 0 and n_pad // cand >= 2:
            tm = cand
            break

    adj = adj.astype(jnp.int8)
    if n_pad != n:
        x = jnp.pad(x, ((0, n_pad - n), (0, 0)))
        adj = jnp.pad(adj, ((0, n_pad - n), (0, n_pad - n)))
        idx = jnp.arange(n, n_pad)
        adj = adj.at[idx, idx].set(jnp.int8(1))

    def shift_bound(asrc_t, adst):
        # LeakyReLU is monotone, so LeakyReLU(a_dst_i + max_j a_src_j) upper-bounds
        # every unmasked logit of row i (tiny wrapper-side op, tiny arrays).
        s = adst + jnp.max(asrc_t, axis=1)[None, :]
        return jnp.maximum(s, 0.2 * s)

    # ---- layer 1: GATConv(F_in, 8, heads=8, concat=True) + ELU --------------
    h1, asrc_t1, adst1 = gat_prep(
        x, params["w1"], _head_proj(params["att_src1"]), _head_proj(params["att_dst1"]),
        tm=tm, h_pad=128)
    act1 = gat_attention(
        h1, asrc_t1, adst1, shift_bound(asrc_t1, adst1),
        params["bias1"].reshape(1, -1), adj,
        heads=heads1, out_ch=hid, tm=tm, out_pad=128, apply_elu=True)

    # F.dropout(p=0.6) — identity in eval mode.

    # ---- layer 2: GATConv(64, num_classes, heads=1, concat=False) + log_softmax
    w2p = jnp.zeros((128, nc), jnp.float32).at[:heads1 * hid, :].set(params["w2"])
    h2, asrc_t2, adst2 = gat_prep(
        act1, w2p, _head_proj(params["att_src2"]), _head_proj(params["att_dst2"]),
        tm=tm, h_pad=128)
    out = gat_attention(
        h2, asrc_t2, adst2, shift_bound(asrc_t2, adst2),
        params["bias2"].reshape(1, -1), adj,
        heads=1, out_ch=nc, tm=tm, out_pad=128, apply_log_softmax=True)

    return out[:n, :nc]


# ---------------------------------------------------------------------------
# Pure-JAX reference (same math, no Pallas) for sanity checking
# ---------------------------------------------------------------------------
def gat_layer_ref(x, w, att_src, att_dst, bias, adj, heads, out_ch,
                  apply_elu=False, apply_log_softmax=False):
    n = x.shape[0]
    h = (x @ w).reshape(n, heads, out_ch)
    a_s = jnp.einsum("nhc,hc->nh", h, att_src)
    a_d = jnp.einsum("nhc,hc->nh", h, att_dst)
    e = a_d[:, None, :] + a_s[None, :, :]                      # e[i, j, head]
    e = jnp.where(e > 0.0, e, 0.2 * e)
    mask = (adj > 0.0)[:, :, None]
    e = jnp.where(mask, e, -1e30)
    e = e - jnp.max(e, axis=1, keepdims=True)
    p = jnp.where(mask, jnp.exp(e), 0.0)
    attn = p / jnp.sum(p, axis=1, keepdims=True)
    out = jnp.einsum("ijh,jhc->ihc", attn, h).reshape(n, heads * out_ch) + bias
    if apply_elu:
        out = jnp.where(out > 0.0, out, jnp.expm1(out))
    if apply_log_softmax:
        z = out - jnp.max(out, axis=1, keepdims=True)
        out = z - jnp.log(jnp.sum(jnp.exp(z), axis=1, keepdims=True))
    return out


def gat_model_ref(x, adj, params):
    h = gat_layer_ref(x, params["w1"], params["att_src1"], params["att_dst1"],
                      params["bias1"], adj, 8, 8, apply_elu=True)
    return gat_layer_ref(h, params["w2"], params["att_src2"], params["att_dst2"],
                         params["bias2"], adj, 1, params["num_classes"],
                         apply_log_softmax=True)


# ---------------------------------------------------------------------------
if __name__ == "__main__":
    key = jax.random.PRNGKey(0)
    N, NUM_FEATURES, NUM_CLASSES = 32, 16, 4
    HID, HEADS = 8, 8

    k_x, k_adj, k_w1, k_as1, k_ad1, k_w2, k_as2, k_ad2 = jax.random.split(key, 8)

    # Node features.
    x = jax.random.normal(k_x, (N, NUM_FEATURES), dtype=jnp.float32)

    # Deterministic synthetic graph -> edge_index (2, E), PyG convention.
    A = np.array(jax.random.bernoulli(k_adj, 0.2, (N, N)))
    A = np.logical_or(A, A.T)
    np.fill_diagonal(A, False)
    src, dst = np.nonzero(A)
    edge_index = jnp.stack([jnp.asarray(src, jnp.int32), jnp.asarray(dst, jnp.int32)])

    # Dense adjacency with self-loops: adj[i, j] = 1 iff edge j -> i.
    adj = jnp.zeros((N, N), jnp.float32)
    adj = adj.at[edge_index[1], edge_index[0]].set(1.0)
    adj = jnp.maximum(adj, jnp.eye(N, dtype=jnp.float32))

    # Deterministic parameter init (Glorot-ish scaling), biases zero.
    def glorot(k, shape):
        fan_in, fan_out = shape[0], shape[-1]
        s = jnp.sqrt(6.0 / (fan_in + fan_out))
        return jax.random.uniform(k, shape, jnp.float32, -s, s)

    params = {
        "num_classes": NUM_CLASSES,
        "w1": glorot(k_w1, (NUM_FEATURES, HEADS * HID)),
        "att_src1": glorot(k_as1, (HEADS, HID)),
        "att_dst1": glorot(k_ad1, (HEADS, HID)),
        "bias1": jnp.zeros((HEADS * HID,), jnp.float32),
        "w2": glorot(k_w2, (HEADS * HID, NUM_CLASSES)),
        "att_src2": glorot(k_as2, (1, NUM_CLASSES)),
        "att_dst2": glorot(k_ad2, (1, NUM_CLASSES)),
        "bias2": jnp.zeros((NUM_CLASSES,), jnp.float32),
    }

    out = jax.block_until_ready(gat_model(x, adj, params))
    ref = jax.block_until_ready(gat_model_ref(x, adj, params))
    np.testing.assert_allclose(np.asarray(out), np.asarray(ref), rtol=1e-3, atol=1e-3)

    assert out.shape == (N, NUM_CLASSES)
    print("KERNEL_OK")
</pallas_src>

<mosaic_0001>
module attributes {stable_mosaic.version = 11 : i64} {
  func.func @_gat_prep_kernel(%arg0: i32, %arg1: memref<128x16xf32, #tpu.memory_space<vmem>>, %arg2: memref<16x64xf32, #tpu.memory_space<vmem>>, %arg3: memref<64x8xf32, #tpu.memory_space<vmem>>, %arg4: memref<64x8xf32, #tpu.memory_space<vmem>>, %arg5: memref<128x128xf32, #tpu.memory_space<vmem>>, %arg6: memref<8x128xf32, #tpu.memory_space<vmem>>, %arg7: memref<128x8xf32, #tpu.memory_space<vmem>>) attributes {dimension_semantics = [#tpu.dimension_semantics<parallel>], iteration_bounds = array<i64: 2>, scalar_prefetch = 0 : i64, scratch_operands = 0 : i64, tpu.core_type = #tpu.core_type<tc>, window_params = [{transform_indices = @transform_0, window_bounds = array<i64: 128, 16>}, {pipeline_mode = #tpu.pipeline_mode<synchronous>, transform_indices = @transform_1, window_bounds = array<i64: 16, 64>}, {pipeline_mode = #tpu.pipeline_mode<synchronous>, transform_indices = @transform_2, window_bounds = array<i64: 64, 8>}, {pipeline_mode = #tpu.pipeline_mode<synchronous>, transform_indices = @transform_3, window_bounds = array<i64: 64, 8>}, {transform_indices = @transform_4, window_bounds = array<i64: 128, 128>}, {transform_indices = @transform_5, window_bounds = array<i64: 8, 128>}, {transform_indices = @transform_6, window_bounds = array<i64: 128, 8>}]} {
    %c0 = arith.constant 0 : index
    %c0_0 = arith.constant 0 : index
    %0 = vector.load %arg1[%c0, %c0_0] : memref<128x16xf32, #tpu.memory_space<vmem>>, vector<128x16xf32>
    %c0_1 = arith.constant 0 : index
    %c0_2 = arith.constant 0 : index
    %1 = vector.load %arg2[%c0_1, %c0_2] : memref<16x64xf32, #tpu.memory_space<vmem>>, vector<16x64xf32>
    %cst = arith.constant dense<0.000000e+00> : vector<128x64xf32>
    %2 = tpu.matmul %0, %1, %cst {dimension_numbers = #tpu.dot_dimension_numbers<[1], [0], [0], [1], [0, 0, 1, 1], [], []>} : vector<128x16xf32>, vector<16x64xf32>, vector<128x64xf32> -> vector<128x64xf32>
    %c0_3 = arith.constant 0 : index
    %c0_4 = arith.constant 0 : index
    %3 = vector.load %arg3[%c0_3, %c0_4] : memref<64x8xf32, #tpu.memory_space<vmem>>, vector<64x8xf32>
    %cst_5 = arith.constant dense<0.000000e+00> : vector<128x8xf32>
    %4 = tpu.matmul %2, %3, %cst_5 {dimension_numbers = #tpu.dot_dimension_numbers<[1], [0], [0], [1], [0, 0, 1, 1], [], []>} : vector<128x64xf32>, vector<64x8xf32>, vector<128x8xf32> -> vector<128x8xf32>
    %c0_6 = arith.constant 0 : index
    %c0_7 = arith.constant 0 : index
    %5 = vector.load %arg4[%c0_6, %c0_7] : memref<64x8xf32, #tpu.memory_space<vmem>>, vector<64x8xf32>
    %cst_8 = arith.constant dense<0.000000e+00> : vector<128x8xf32>
    %6 = tpu.matmul %2, %5, %cst_8 {dimension_numbers = #tpu.dot_dimension_numbers<[1], [0], [0], [1], [0, 0, 1, 1], [], []>} : vector<128x64xf32>, vector<64x8xf32>, vector<128x8xf32> -> vector<128x8xf32>
    %cst_9 = arith.constant 1.000000e+00 : f32
    %7 = vector.broadcast %cst_9 : f32 to vector<128x1xf32>
    %cst_10 = arith.constant 0.000000e+00 : f32
    %8 = vector.broadcast %cst_10 : f32 to vector<128x63xf32>
    %9 = tpu.concatenate %2, %7, %8 in 1 : vector<128x64xf32>, vector<128x1xf32>, vector<128x63xf32> -> vector<128x128xf32>
    %c0_11 = arith.constant 0 : index
    %c0_12 = arith.constant 0 : index
    %10 = vector.load %arg5[%c0_11, %c0_12] : memref<128x128xf32, #tpu.memory_space<vmem>>, vector<128x128xf32>
    tpu.vector_store %arg5[%c0_11, %c0_12], %9 {strides = array<i32>} : memref<128x128xf32, #tpu.memory_space<vmem>>, vector<128x128xf32>,
    %11 = tpu.transpose %4, [1, 0] : vector<128x8xf32> -> vector<8x128xf32>
    %c0_13 = arith.constant 0 : index
    %c0_14 = arith.constant 0 : index
    %12 = vector.load %arg6[%c0_13, %c0_14] : memref<8x128xf32, #tpu.memory_space<vmem>>, vector<8x128xf32>
    tpu.vector_store %arg6[%c0_13, %c0_14], %11 {strides = array<i32>} : memref<8x128xf32, #tpu.memory_space<vmem>>, vector<8x128xf32>,
    %c0_15 = arith.constant 0 : index
    %c0_16 = arith.constant 0 : index
    %13 = vector.load %arg7[%c0_15, %c0_16] : memref<128x8xf32, #tpu.memory_space<vmem>>, vector<128x8xf32>
    tpu.vector_store %arg7[%c0_15, %c0_16], %6 {strides = array<i32>} : memref<128x8xf32, #tpu.memory_space<vmem>>, vector<128x8xf32>,
    return
  }
  func.func @transform_0(%arg0: i32) -> (i32, i32) {
    %c0_i32 = arith.constant 0 : i32
    %c0_i32_0 = arith.constant 0 : i32
    return %arg0, %c0_i32 : i32, i32
  }
  func.func @transform_1(%arg0: i32) -> (i32, i32) {
    %c0_i32 = arith.constant 0 : i32
    %c0_i32_0 = arith.constant 0 : i32
    %c0_i32_1 = arith.constant 0 : i32
    return %c0_i32, %c0_i32_0 : i32, i32
  }
  func.func @transform_2(%arg0: i32) -> (i32, i32) {
    %c0_i32 = arith.constant 0 : i32
    %c0_i32_0 = arith.constant 0 : i32
    %c0_i32_1 = arith.constant 0 : i32
    return %c0_i32, %c0_i32_0 : i32, i32
  }
  func.func @transform_3(%arg0: i32) -> (i32, i32) {
    %c0_i32 = arith.constant 0 : i32
    %c0_i32_0 = arith.constant 0 : i32
    %c0_i32_1 = arith.constant 0 : i32
    return %c0_i32, %c0_i32_0 : i32, i32
  }
  func.func @transform_4(%arg0: i32) -> (i32, i32) {
    %c0_i32 = arith.constant 0 : i32
    %c0_i32_0 = arith.constant 0 : i32
    return %arg0, %c0_i32 : i32, i32
  }
  func.func @transform_5(%arg0: i32) -> (i32, i32) {
    %c0_i32 = arith.constant 0 : i32
    %c0_i32_0 = arith.constant 0 : i32
    return %c0_i32, %arg0 : i32, i32
  }
  func.func @transform_6(%arg0: i32) -> (i32, i32) {
    %c0_i32 = arith.constant 0 : i32
    %c0_i32_0 = arith.constant 0 : i32
    return %arg0, %c0_i32 : i32, i32
  }
}

</mosaic_0001>

<bundles_post_ra>
// kernel: tpu_custom_call.1
= control target key start
LH: loop header
LB: loop body
LE: loop exit
PB: predicated region body
PF: predicated region fallthrough
CT: control target
= control target key end

     0   :  { %12 = vsyncpa [#allocation3], 0  ;;  %s1923_s0 = inlined_call_operand.vmem [shape: f32[256,16], index: 0, kind: input, shape index: {}]   ;;  %s1924_s1 = inlined_call_operand.vmem [shape: f32[16,64], index: 1, kind: input, shape index: {}]   ;;  %s1925_s2 = inlined_call_operand.vmem [shape: f32[64,8], index: 2, kind: input, shape index: {}]   ;;  %s1926_s3 = inlined_call_operand.vmem [shape: f32[64,8], index: 3, kind: input, shape index: {}]   ;;  %s1927_s4 = inlined_call_operand.hbm [shape: f32[256,128], index: 4, kind: output, shape index: {0}]   ;;  %s1928_s5 = inlined_call_operand.hbm [shape: f32[8,256], index: 5, kind: output, shape index: {1}]   ;;  %s1929_s6 = inlined_call_operand.vmem [shape: f32[256,8], index: 6, kind: output, shape index: {2}]  }
   0x1   :  { %14 = vsyncpa [#allocation3 + $0x1], 0 }
   0x2   :  { %15 = vsyncpa [#allocation5], 0 }
   0x3   :  { %17 = vsyncpa [#allocation5 + $0x1], 0  ;;  %s1562_s21 = smov 0   ;;  %s1564_s22 = smov 0  }
   0x4   :  { %s1566_s23 = smov 0   ;;  %s1568_s24 = smov 0  }
   0x5 LB: > { %s1583_s25 = sadd.s32 4294967295, %s1521_s24   ;;  %s1103_s26 = sadd.s32 4294967294, %s1521_s24   ;;  %s1521_s24 = sphi %s1568_s24, %s1935_s24   ;;  %s1517_s23 = sphi %s1566_s23, %s1934_s23   ;;  %s1513_s22 = sphi %s1564_s22, %s1933_s22   ;;  %s1509_s21 = sphi %s1562_s21, %s1932_s21  }
   0x6   : > { %s1587_s27 = sadd.s32 1, %s1521_s24   ;;  %s119_s28 = sadd.s32 1, %s1517_s23 }
   0x7   : > { %s116_s29 = ssub.s32 %s1521_s24, %s1587_s27  ;;  %p129_p0 = scmp.ne.s32.totalorder %s1517_s23, %s1513_s22 }
   0x8   : > { %p117_p1 = scmp.eq.s32.totalorder %s116_s29, 0  ;;  %p130_p2 = scmp.eq.s32.totalorder %s1583_s25, 1 }
   0x9   : > { %p135_p3 = scmp.ne.s32.totalorder %s1513_s22, %s1509_s21  ;;  %p136_p4 = scmp.eq.s32.totalorder %s1103_s26, 1 }
   0xa   : > { %s1598_s30 = scalar_select %p117_p1, %s1517_s23, %s119_s28  }
   0xb   : > { %p1600_p5 = por %p130_p2, %p129_p0  ;;  %p1604_p6 = por %p136_p4, %p135_p3 }
   0xc   : > { %p1106_p7 = scmp.ge.s32.totalorder %s1521_s24, 1  ;;  %p224_p8 = scmp.lt.s32.totalorder %s1521_s24, 3 }
   0xe   : > { %p225_p9 = pnand %p1106_p7, %p224_p8 }
   0xf   : > { %v293_v0 = vld [vmem:[%s1924_s1] sm:$0xff] (!%p225_p9)  ;;  %v294_v1 = vld [vmem:[%s1924_s1 + $0x8] sm:$0xff] (!%p225_p9)  ;;  %s1109_s13 = sshll.u32 (!%p225_p9), %s1583_s25, 4  ;;  %vm295_vm0 = vcmask (!%p225_p9), 130048   ;;  %v491_v9 = vld [vmem:[%s1925_s2 + $0x10] sm:$0xff] (!%p225_p9)  ;;  %s1708_s10 = sand.u32 (!%p225_p9), 1, %s1513_s22  }
  0x10   : > { %228 = sbr.rel (%p225_p9) target bundleno = 607 (0x25f), region = 36  ;;  %v489_v2 = vld [vmem:[%s1925_s2] sm:$0xff] (!%p225_p9)  ;;  %v1343_v3 = vpack.c.bf16 (!%p225_p9), %v294_v1, %v293_v0  ;;  %p265_p10 = scmp.lt.s32.totalorder (!%p225_p9), %s1109_s13, 31  ;;  %v490_v4 = vld [vmem:[%s1925_s2 + $0x8] sm:$0xff] (!%p225_p9)  ;;  %v492_v10 = vld [vmem:[%s1925_s2 + $0x18] sm:$0xff] (!%p225_p9)  ;;  %vm497_vm1 = vcmask (!%p225_p9), 523264  }
  0x11   : > { %v691_v5 = vld [vmem:[%s1926_s3] sm:$0xff] (!%p225_p9)  ;;  %v692_v6 = vld [vmem:[%s1926_s3 + $0x8] sm:$0xff] (!%p225_p9)  ;;  %v1347_v7 = vpack.c.bf16 (!%p225_p9), %v490_v4, %v489_v2  ;;  %v693_v11 = vld [vmem:[%s1926_s3 + $0x10] sm:$0xff] (!%p225_p9)  ;;  %v1351_v17 = vpack.c.bf16 (!%p225_p9), %v492_v10, %v491_v9  ;;  %s1107_s11 = sshll.u32 (!%p225_p9), %s1708_s10, 7  ;;  %vm860_vm2 = vcmask (!%p225_p9), 531456   ;;  %vm926_vm3 = vcmask (!%p225_p9), 64512  }
  0x12   : > { %v1363_v8 = vpack.c.bf16 (!%p225_p9), %v692_v6, %v691_v5  ;;  %1344 = vmatprep.subr.bf16.mxu0 (!%p225_p9), %v1343_v3  ;;  %1379 = vmatprep.subr.bf16.mxu1 (!%p225_p9), %v1343_v3  ;;  %v694_v12 = vld [vmem:[%s1926_s3 + $0x18] sm:$0xff] (!%p225_p9)  ;;  %v493_v18 = vld [vmem:[%s1925_s2 + $0x20] sm:$0xff] (!%p225_p9)  ;;  %v494_v19 = vld [vmem:[%s1925_s2 + $0x28] sm:$0xff] (!%p225_p9)  ;;  %s944_s20 = scalar_lea.sflag (!%p225_p9), [#allocation3], %s1708_s10  ;;  %s1523_s29 = smov (!%p225_p9), [#allocation2]  }
  0x13   : > { %1346 = vmatpush3.bf16.msra.mxu0 (!%p225_p9), %v1343_v3  ;;  %1380 = vmatpush3.bf16.msra.mxu1 (!%p225_p9), %v1343_v3  ;;  %v1367_v23 = vpack.c.bf16 (!%p225_p9), %v694_v12, %v693_v11  ;;  %v695_v25 = vld [vmem:[%s1926_s3 + $0x20] sm:$0xff] (!%p225_p9)  ;;  %v696_v26 = vld [vmem:[%s1926_s3 + $0x28] sm:$0xff] (!%p225_p9)  ;;  %v1355_v29 = vpack.c.bf16 (!%p225_p9), %v494_v19, %v493_v18  ;;  %v495_v32 = vld [vmem:[%s1925_s2 + $0x30] sm:$0xff] (!%p225_p9)  ;;  %s1431_s9 = sshll.u32 (!%p225_p9), %s1523_s29, 4  ;;  %s1432_s9 = int_to_ptr.vmem [resolvable:$false] %s1431_s9 }
  0x14   : > { %1348 = vmatprep.subr.bf16.mxu1 (!%p225_p9), %v1347_v7  ;;  %1364 = vmatprep.subr.bf16.mxu0 (!%p225_p9), %v1363_v8  ;;  %v1371_v31 = vpack.c.bf16 (!%p225_p9), %v696_v26, %v695_v25  ;;  %v496_v33 = vld [vmem:[%s1925_s2 + $0x38] sm:$0xff] (!%p225_p9)  ;;  %v697_v35 = vld [vmem:[%s1926_s3 + $0x30] sm:$0xff] (!%p225_p9) }
  0x15   : > { %v698_v36 = vld [vmem:[%s1926_s3 + $0x38] sm:$0xff] (!%p225_p9)  ;;  %v1359_v39 = vpack.c.bf16 (!%p225_p9), %v496_v33, %v495_v32 }
  0x16   : > { %v1375_v41 = vpack.c.bf16 (!%p225_p9), %v698_v36, %v697_v35 }
  0x17   : > { %s1937_s13 = smov (!%p265_p10, %s1109_s13), 31 }
  0x18   : > { %s1110_s28 = sshll.u32 %s1937_s13, 3  ;;  %s1168_s13 = sshll.u32 %s1583_s25, 11 }
  0x19   : > { %s1640_s12 = scalar_lea.vmem %s1923_s0, %s1110_s28  ;;  %s1808_s16 = scalar_lea.vmem %s1929_s6, %s1110_s28 }
  0x1a   : > { %v277_v13 = vld [vmem:[%s1640_s12] sm:$0xff]  ;;  %v278_v14 = vld [vmem:[%s1640_s12 + $0x8] sm:$0xff]  ;;  %v279_v15 = vld [vmem:[%s1640_s12 + $0x10] sm:$0xff]  ;;  %s1818_s18 = scalar_lea.hbm %s1927_s4, %s1168_s13 }
  0x1b   : > { %1239 = vmatprep.mubr.msk.f32.mxu0 %vm295_vm0, %v277_v13  ;;  %v285_v16 = vld [vmem:[%s1640_s12 + $0x40] sm:$0xff]  ;;  %v280_v20 = vld [vmem:[%s1640_s12 + $0x18] sm:$0xff]  ;;  %v286_v21 = vld [vmem:[%s1640_s12 + $0x48] sm:$0xff] }
  0x1c   : > { %1240 = vmatmul.mubr.msk.f32.vlgmr.msra.gmra.mrb[0].mxu0 %vm295_vm0, %v278_v14  ;;  %1251 = vmatprep.mubr.msk.f32.mxu1 %vm295_vm0, %v285_v16  ;;  %v287_v22 = vld [vmem:[%s1640_s12 + $0x50] sm:$0xff]  ;;  %v281_v24 = vld [vmem:[%s1640_s12 + $0x20] sm:$0xff]  ;;  %v288_v27 = vld [vmem:[%s1640_s12 + $0x58] sm:$0xff] }
  0x1d   : > { %1242 = vmatprep.mubr.msk.f32.mxu0 %vm295_vm0, %v279_v15  ;;  %1252 = vmatmul.mubr.msk.f32.vlgmr.msra.gmra.mrb[0].mxu1 %vm295_vm0, %v286_v21  ;;  %v289_v28 = vld [vmem:[%s1640_s12 + $0x60] sm:$0xff]  ;;  %v282_v30 = vld [vmem:[%s1640_s12 + $0x28] sm:$0xff]  ;;  %v283_v34 = vld [vmem:[%s1640_s12 + $0x30] sm:$0xff] }
  0x1e   : > { %1366 = vmatpush3.bf16.msra.mxu0 %v1363_v8  ;;  %1254 = vmatprep.mubr.msk.f32.mxu1 %vm295_vm0, %v287_v22  ;;  %v290_v37 = vld [vmem:[%s1640_s12 + $0x68] sm:$0xff]  ;;  %v291_v38 = vld [vmem:[%s1640_s12 + $0x70] sm:$0xff]  ;;  %v284_v40 = vld [vmem:[%s1640_s12 + $0x38] sm:$0xff] }
  0x1f   : > { %1350 = vmatpush3.bf16.msra.mxu1 %v1347_v7  ;;  %1368 = vmatprep.subr.bf16.mxu0 %v1367_v23  ;;  %v292_v42 = vld [vmem:[%s1640_s12 + $0x78] sm:$0xff]  ;;  %s1718_s12 = scalar_lea.vmem [#allocation2], %s1107_s11  ;;  %s1433_s11 = scalar_lea.vmem %s1432_s9, 4096 }
  0x20   : > { %1243 = vmatmul.mubr.msk.f32.gmra.mrb[2].mxu0 %vm295_vm0, %v280_v20  ;;  %1352 = vmatprep.subr.bf16.mxu1 %v1351_v17  ;;  %s967_s19 = sshll.u32 %s1718_s12, 4  ;;  %s1823_s19 = int_to_ptr.vmem [resolvable:$true] %s967_s19 }
  0x21   : > { %1245 = vmatprep.mubr.msk.f32.mxu0 %vm295_vm0, %v281_v24  ;;  %1255 = vmatmul.mubr.msk.f32.gmra.mrb[2].mxu1 %vm295_vm0, %v288_v27  ;;  %s1427_s26 = scalar_lea.vmem %s1823_s19, 2048  ;;  %p1434_p0 = scmp.lt.s32.totalorder %s1823_s19, %s1432_s9 }
  0x22   : > { %1370 = vmatpush3.bf16.msra.mxu0 %v1367_v23  ;;  %1257 = vmatprep.mubr.msk.f32.mxu1 %vm295_vm0, %v289_v28  ;;  %p1428_p11 = scmp.ne.s32.totalorder %s1823_s19, %s1427_s26  ;;  %p1435_p1 = scmp.lt.s32.totalorder %s1433_s11, %s1427_s26 }
  0x23   : > { %1354 = vmatpush3.bf16.msra.mxu1 %v1351_v17  ;;  %1372 = vmatprep.subr.bf16.mxu0 %v1371_v31 }
  0x24   : > { %1246 = vmatmul.mubr.msk.f32.gmra.mrb[4].mxu0 %vm295_vm0, %v282_v30  ;;  %1356 = vmatprep.subr.bf16.mxu1 %v1355_v29  ;;  %p1429_p12 = pnand %p1428_p11, %p1600_p5  ;;  %p1436_p2 = por %p1435_p1, %p1434_p0 }
  0x25   : > { %1248 = vmatprep.mubr.msk.f32.mxu0 %vm295_vm0, %v283_v34  ;;  %1258 = vmatmul.mubr.msk.f32.gmra.mrb[4].mxu1 %vm295_vm0, %v290_v37 }
  0x26   : > { %1374 = vmatpush3.bf16.msra.mxu0 %v1371_v31  ;;  %1260 = vmatprep.mubr.msk.f32.mxu1 %vm295_vm0, %v291_v38  ;;  %p1430_p13 = pneg %p1429_p12 }
  0x27   : > { %1358 = vmatpush3.bf16.msra.mxu1 %v1355_v29  ;;  %1376 = vmatprep.subr.bf16.mxu0 %v1375_v41 }
  0x28   : > { %1249 = vmatmul.mubr.msk.f32.gmra.mrb[6].mxu0 %vm295_vm0, %v284_v40  ;;  %1360 = vmatprep.subr.bf16.mxu1 %v1359_v39  ;;  %p1437_p3 = pnand %p1436_p2, %p1430_p13 }
  0x29   : > { %1261 = vmatmul.mubr.msk.f32.gmra.mrb[6].mxu1 %vm295_vm0, %v292_v42 }
  0x2a   : > { %1378 = vmatpush3.bf16.msra.mxu0 %v1375_v41 }
  0x2b   : > { %1362 = vmatpush3.bf16.msra.mxu1 %v1359_v39 }
  0xef   : > { %v1241_v43 = vpop.f32.mrb[0].mxu0 }
  0xf0   : > { %v845_v44 = vsel %vm497_vm1, %v1241_v43, 1.0  ;;  %v410_v45 = vpop.f32.mrb[1].mxu0  ;;  %v1716_v48 = vpop.f32.mrb[0].mxu1 }
  0xf1   : > { %v862_v46 = vsel %vm860_vm2, %v845_v44, 0.0  ;;  %v844_v47 = vsel %vm497_vm1, %v410_v45, 1.0  ;;  %1279 = vmatprep.mubr.msk.f32.mxu1 %vm497_vm1, %v410_v45  ;;  %1319 = vmatprep.mubr.msk.f32.mxu0 %vm497_vm1, %v410_v45  ;;  %v853_v50 = vsel %vm497_vm1, %v1716_v48, 1.0  ;;  %v1726_v51 = vpop.f32.mrb[1].mxu1 }
  0xf2   : > { %878 = vst [vmem:[%s1718_s12 + $0x8] sm:$0xff] %v862_v46  ;;  %v861_v49 = vsel %vm860_vm2, %v844_v47, 0.0  ;;  %1280 = vmatmul.mubr.msk.f32.vlgmr.msra.gmra.mrb[8].mxu1 %vm497_vm1, %v1241_v43  ;;  %1320 = vmatmul.mubr.msk.f32.vlgmr.msra.gmra.mrb[8].mxu0 %vm497_vm1, %v1241_v43  ;;  %v870_v53 = vsel %vm860_vm2, %v853_v50, 0.0  ;;  %v852_v54 = vsel %vm497_vm1, %v1726_v51, 1.0 }
  0xf3   : > { %877 = vst [vmem:[%s1718_s12] sm:$0xff] %v861_v49  ;;  %v1244_v52 = vpop.f32.mrb[2].mxu0  ;;  %886 = vst [vmem:[%s1718_s12 + $0x48] sm:$0xff] %v870_v53  ;;  %v869_v57 = vsel %vm860_vm2, %v852_v54, 0.0 }
  0xf4   : > { %v847_v55 = vsel %vm497_vm1, %v1244_v52, 1.0  ;;  %v420_v56 = vpop.f32.mrb[3].mxu0  ;;  %885 = vst [vmem:[%s1718_s12 + $0x40] sm:$0xff] %v869_v57  ;;  %v1256_v60 = vpop.f32.mrb[2].mxu1 }
  0xf5   : > { %v864_v58 = vsel %vm860_vm2, %v847_v55, 0.0  ;;  %v846_v59 = vsel %vm497_vm1, %v420_v56, 1.0  ;;  %1282 = vmatprep.mubr.msk.f32.mxu1 %vm497_vm1, %v420_v56  ;;  %1322 = vmatprep.mubr.msk.f32.mxu0 %vm497_vm1, %v420_v56  ;;  %v855_v62 = vsel %vm497_vm1, %v1256_v60, 1.0  ;;  %v460_v63 = vpop.f32.mrb[3].mxu1 }
  0xf6   : > { %880 = vst [vmem:[%s1718_s12 + $0x18] sm:$0xff] %v864_v58  ;;  %v863_v61 = vsel %vm860_vm2, %v846_v59, 0.0  ;;  %1283 = vmatmul.mubr.msk.f32.gmra.mrb[10].mxu1 %vm497_vm1, %v1244_v52  ;;  %1323 = vmatmul.mubr.msk.f32.gmra.mrb[10].mxu0 %vm497_vm1, %v1244_v52  ;;  %v872_v1 = vsel %vm860_vm2, %v855_v62, 0.0  ;;  %v854_v2 = vsel %vm497_vm1, %v460_v63, 1.0 }
  0xf7   : > { %879 = vst [vmem:[%s1718_s12 + $0x10] sm:$0xff] %v863_v61  ;;  %v1247_v0 = vpop.f32.mrb[4].mxu0  ;;  %888 = vst [vmem:[%s1718_s12 + $0x58] sm:$0xff] %v872_v1  ;;  %v871_v5 = vsel %vm860_vm2, %v854_v2, 0.0 }
  0xf8   : > { %v849_v3 = vsel %vm497_vm1, %v1247_v0, 1.0  ;;  %v430_v4 = vpop.f32.mrb[5].mxu0  ;;  %887 = vst [vmem:[%s1718_s12 + $0x50] sm:$0xff] %v871_v5  ;;  %v1259_v8 = vpop.f32.mrb[4].mxu1 }
  0xf9   : > { %v866_v6 = vsel %vm860_vm2, %v849_v3, 0.0  ;;  %v848_v7 = vsel %vm497_vm1, %v430_v4, 1.0  ;;  %1285 = vmatprep.mubr.msk.f32.mxu1 %vm497_vm1, %v430_v4  ;;  %1325 = vmatprep.mubr.msk.f32.mxu0 %vm497_vm1, %v430_v4  ;;  %v857_v10 = vsel %vm497_vm1, %v1259_v8, 1.0  ;;  %v470_v11 = vpop.f32.mrb[5].mxu1 }
  0xfa   : > { %882 = vst [vmem:[%s1718_s12 + $0x28] sm:$0xff] %v866_v6  ;;  %v865_v9 = vsel %vm860_vm2, %v848_v7, 0.0  ;;  %1286 = vmatmul.mubr.msk.f32.gmra.mrb[12].mxu1 %vm497_vm1, %v1247_v0  ;;  %1326 = vmatmul.mubr.msk.f32.gmra.mrb[12].mxu0 %vm497_vm1, %v1247_v0  ;;  %v874_v13 = vsel %vm860_vm2, %v857_v10, 0.0  ;;  %v856_v14 = vsel %vm497_vm1, %v470_v11, 1.0 }
  0xfb   : > { %881 = vst [vmem:[%s1718_s12 + $0x20] sm:$0xff] %v865_v9  ;;  %v1250_v12 = vpop.f32.mrb[6].mxu0  ;;  %890 = vst [vmem:[%s1718_s12 + $0x68] sm:$0xff] %v874_v13  ;;  %v873_v17 = vsel %vm860_vm2, %v856_v14, 0.0 }
  0xfc   : > { %v851_v15 = vsel %vm497_vm1, %v1250_v12, 1.0  ;;  %v440_v16 = vpop.f32.mrb[7].mxu0  ;;  %889 = vst [vmem:[%s1718_s12 + $0x60] sm:$0xff] %v873_v17  ;;  %v1262_v20 = vpop.f32.mrb[6].mxu1 }
  0xfd   : > { %v868_v18 = vsel %vm860_vm2, %v851_v15, 0.0  ;;  %v850_v19 = vsel %vm497_vm1, %v440_v16, 1.0  ;;  %1288 = vmatprep.mubr.msk.f32.mxu1 %vm497_vm1, %v440_v16  ;;  %1328 = vmatprep.mubr.msk.f32.mxu0 %vm497_vm1, %v440_v16  ;;  %v859_v22 = vsel %vm497_vm1, %v1262_v20, 1.0  ;;  %v480_v23 = vpop.f32.mrb[7].mxu1 }
  0xfe   : > { %884 = vst [vmem:[%s1718_s12 + $0x38] sm:$0xff] %v868_v18  ;;  %v867_v21 = vsel %vm860_vm2, %v850_v19, 0.0  ;;  %1289 = vmatmul.mubr.msk.f32.gmra.mrb[14].mxu1 %vm497_vm1, %v1250_v12  ;;  %1329 = vmatmul.mubr.msk.f32.gmra.mrb[14].mxu0 %vm497_vm1, %v1250_v12  ;;  %v876_v24 = vsel %vm860_vm2, %v859_v22, 0.0  ;;  %v858_v25 = vsel %vm497_vm1, %v480_v23, 1.0 }
  0xff   : > { %883 = vst [vmem:[%s1718_s12 + $0x30] sm:$0xff] %v867_v21  ;;  %1291 = vmatprep.mubr.msk.f32.mxu1 %vm497_vm1, %v1726_v51  ;;  %1331 = vmatprep.mubr.msk.f32.mxu0 %vm497_vm1, %v1726_v51  ;;  %892 = vst [vmem:[%s1718_s12 + $0x78] sm:$0xff] %v876_v24  ;;  %v875_v26 = vsel %vm860_vm2, %v858_v25, 0.0 }
 0x100   : > { %891 = vst [vmem:[%s1718_s12 + $0x70] sm:$0xff] %v875_v26 }
 0x102   : > { %1292 = vmatmul.mubr.msk.f32.gmra.mrb[16].mxu1 %vm497_vm1, %v1716_v48  ;;  %1332 = vmatmul.mubr.msk.f32.gmra.mrb[16].mxu0 %vm497_vm1, %v1716_v48 }
 0x103   : > { %1294 = vmatprep.mubr.msk.f32.mxu1 %vm497_vm1, %v460_v63  ;;  %1334 = vmatprep.mubr.msk.f32.mxu0 %vm497_vm1, %v460_v63 }
 0x106   : > { %1295 = vmatmul.mubr.msk.f32.gmra.mrb[18].mxu1 %vm497_vm1, %v1256_v60  ;;  %1335 = vmatmul.mubr.msk.f32.gmra.mrb[18].mxu0 %vm497_vm1, %v1256_v60 }
 0x107   : > { %1297 = vmatprep.mubr.msk.f32.mxu1 %vm497_vm1, %v470_v11  ;;  %1337 = vmatprep.mubr.msk.f32.mxu0 %vm497_vm1, %v470_v11 }
 0x10a   : > { %1298 = vmatmul.mubr.msk.f32.gmra.mrb[20].mxu1 %vm497_vm1, %v1259_v8  ;;  %1338 = vmatmul.mubr.msk.f32.gmra.mrb[20].mxu0 %vm497_vm1, %v1259_v8 }
 0x10b   : > { %1300 = vmatprep.mubr.msk.f32.mxu1 %vm497_vm1, %v480_v23  ;;  %1340 = vmatprep.mubr.msk.f32.mxu0 %vm497_vm1, %v480_v23 }
 0x10e   : > { %1301 = vmatmul.mubr.msk.f32.gmra.mrb[22].mxu1 %vm497_vm1, %v1262_v20  ;;  %1341 = vmatmul.mubr.msk.f32.gmra.mrb[22].mxu0 %vm497_vm1, %v1262_v20 }
 0x1c5   : > { %v1281_v27 = vpop.f32.mrb[8].mxu1  ;;  %v1321_v28 = vpop.f32.mrb[8].mxu0 }
 0x1c6   : > { %928 = vst.msk [vmem:[%s1808_s16 + $0x8] sm:$0xff] %vm926_vm3, %v1321_v28  ;;  %v612_v29 = vpop.f32.mrb[9].mxu1  ;;  %v765_v30 = vpop.f32.mrb[9].mxu0 }
 0x1c7   : > { %927 = vst.msk [vmem:[%s1808_s16] sm:$0xff] %vm926_vm3, %v765_v30  ;;  %893 = vxpose.xlu0.b32.start [1/16] (narrow) %v612_v29, 8 }
 0x1c9   : > { %v1284_v31 = vpop.f32.mrb[10].mxu1  ;;  %v1324_v32 = vpop.f32.mrb[10].mxu0 }
 0x1ca   : > { %930 = vst.msk [vmem:[%s1808_s16 + $0x18] sm:$0xff] %vm926_vm3, %v1324_v32  ;;  %v622_v33 = vpop.f32.mrb[11].mxu1  ;;  %v775_v34 = vpop.f32.mrb[11].mxu0 }
 0x1cb   : > { %929 = vst.msk [vmem:[%s1808_s16 + $0x10] sm:$0xff] %vm926_vm3, %v775_v34  ;;  %894 = vxpose.xlu0.b32.cont [2/16] (narrow) %v1281_v27, 8 }
 0x1cc   : > { %1440 = shalt.err (!%p1437_p3)
}
 0x1cd   : > { %s1441_s12 = scalar_lea.hbm %s1818_s18, 2048  ;;  %s1445_s13 = scalar_lea.hbm %s1927_s4, 4096 }
 0x1ce   : > { %p1442_p4 = scmp.ne.s32.totalorder %s1818_s18, %s1441_s12  ;;  %p1446_p9 = scmp.lt.u32.totalorder %s1818_s18, %s1927_s4 }
 0x1cf   : > { %p1447_p10 = scmp.lt.u32.totalorder %s1445_s13, %s1441_s12  ;;  %p1449_p12 = scmp.lt.u32.totalorder %s1441_s12, %s1818_s18 }
 0x1d0   : > { %p1443_p7 = pnand %p1442_p4, %p1600_p5 }
 0x1d1   : > { %p1448_p11 = por %p1447_p10, %p1446_p9 }
 0x1d2   : > { %p1444_p8 = pneg %p1443_p7 }
 0x1d3   : > { %p1450_p13 = por %p1449_p12, %p1448_p11 }
 0x1d5   : > { %p1451_p0 = pnand %p1450_p13, %p1444_p8 }
 0x1d7   : > { %1454 = shalt.err (!%p1451_p0)
}
 0x1d8   : > { %s1524_s26 = smov 128   ;;  %s1525_s29 = smov 8   ;;  %v1287_v35 = vpop.f32.mrb[12].mxu1  ;;  %v1327_v36 = vpop.f32.mrb[12].mxu0  ;;  %895 = vxpose.xlu0.b32.cont [3/16] (narrow) %v622_v33, 8 }
 0x1d9   : > { %1381 = dma.vmem_to_hbm [thread:$0]  (%p1600_p5), %s1823_s19, 2048, %s1818_s18, %s944_s20, %s1524_s26, %s1524_s26, %s1525_s29   ;;  %v632_v37 = vpop.f32.mrb[13].mxu1  ;;  %v785_v38 = vpop.f32.mrb[13].mxu0 }
 0x1da   : > { %932 = vst.msk [vmem:[%s1808_s16 + $0x28] sm:$0xff] %vm926_vm3, %v1327_v36  ;;  %931 = vst.msk [vmem:[%s1808_s16 + $0x20] sm:$0xff] %vm926_vm3, %v785_v38  ;;  %v1290_v39 = vpop.f32.mrb[14].mxu1  ;;  %v1330_v40 = vpop.f32.mrb[14].mxu0  ;;  %s1108_s18 = sshll.u32 %s1708_s10, 3  ;;  %s1165_s9 = sshll.u32 %s1583_s25, 7 }
 0x1db   : > { %934 = vst.msk [vmem:[%s1808_s16 + $0x38] sm:$0xff] %vm926_vm3, %v1330_v40  ;;  %v642_v41 = vpop.f32.mrb[15].mxu1  ;;  %v795_v42 = vpop.f32.mrb[15].mxu0  ;;  %s256_s19 = scalar_lea.vmem [#allocation4], %s1108_s18  ;;  %s949_s14 = scalar_lea.sflag [#allocation5], %s1708_s10 }
 0x1dc   : > { %896 = vxpose.xlu0.b32.cont [4/16] (narrow) %v1284_v31, 8  ;;  %933 = vst.msk [vmem:[%s1808_s16 + $0x30] sm:$0xff] %vm926_vm3, %v795_v42  ;;  %v1293_v43 = vpop.f32.mrb[16].mxu1  ;;  %v1333_v44 = vpop.f32.mrb[16].mxu0  ;;  %s983_s20 = sshll.u32 %s256_s19, 4  ;;  %s1526_s13 = smov [#allocation4]   ;;  %s1877_s20 = int_to_ptr.vmem [resolvable:$true] %s983_s20 }
 0x1dd   : > { %936 = vst.msk [vmem:[%s1808_s16 + $0x48] sm:$0xff] %vm926_vm3, %v1333_v44  ;;  %v652_v45 = vpop.f32.mrb[17].mxu1  ;;  %v805_v46 = vpop.f32.mrb[17].mxu0  ;;  %s1455_s15 = scalar_lea.vmem %s1877_s20, 128  ;;  %s1459_s25 = sshll.u32 %s1526_s13, 4  ;;  %s1460_s25 = int_to_ptr.vmem [resolvable:$false] %s1459_s25 }
 0x1de   : > { %935 = vst.msk [vmem:[%s1808_s16 + $0x40] sm:$0xff] %vm926_vm3, %v805_v46  ;;  %v1296_v47 = vpop.f32.mrb[18].mxu1  ;;  %v1336_v48 = vpop.f32.mrb[18].mxu0  ;;  %p1456_p1 = scmp.ne.s32.totalorder %s1877_s20, %s1455_s15  ;;  %s1461_s17 = scalar_lea.vmem %s1460_s25, 256 }
 0x1df   : > { %938 = vst.msk [vmem:[%s1808_s16 + $0x58] sm:$0xff] %vm926_vm3, %v1336_v48  ;;  %v662_v49 = vpop.f32.mrb[19].mxu1  ;;  %v815_v50 = vpop.f32.mrb[19].mxu0  ;;  %p1462_p4 = scmp.lt.s32.totalorder %s1877_s20, %s1460_s25  ;;  %p1463_p7 = scmp.lt.s32.totalorder %s1461_s17, %s1455_s15 }
 0x1e0   : > { %897 = vxpose.xlu0.b32.cont [5/16] (narrow) %v632_v37, 8  ;;  %937 = vst.msk [vmem:[%s1808_s16 + $0x50] sm:$0xff] %vm926_vm3, %v815_v50  ;;  %v1299_v51 = vpop.f32.mrb[20].mxu1  ;;  %v1339_v52 = vpop.f32.mrb[20].mxu0  ;;  %p1457_p2 = pnand %p1456_p1, %p1600_p5 }
 0x1e1   : > { %940 = vst.msk [vmem:[%s1808_s16 + $0x68] sm:$0xff] %vm926_vm3, %v1339_v52  ;;  %v672_v53 = vpop.f32.mrb[21].mxu1  ;;  %v825_v54 = vpop.f32.mrb[21].mxu0  ;;  %p1464_p8 = por %p1463_p7, %p1462_p4 }
 0x1e2   : > { %939 = vst.msk [vmem:[%s1808_s16 + $0x60] sm:$0xff] %vm926_vm3, %v825_v54  ;;  %v1302_v55 = vpop.f32.mrb[22].mxu1  ;;  %v1342_v56 = vpop.f32.mrb[22].mxu0  ;;  %p1458_p3 = pneg %p1457_p2 }
 0x1e3   : > { %942 = vst.msk [vmem:[%s1808_s16 + $0x78] sm:$0xff] %vm926_vm3, %v1342_v56  ;;  %v682_v57 = vpop.f32.mrb[23].mxu1  ;;  %v835_v58 = vpop.f32.mrb[23].mxu0 }
 0x1e4   : > { %898 = vxpose.xlu0.b32.cont [6/16] (narrow) %v1287_v35, 8  ;;  %941 = vst.msk [vmem:[%s1808_s16 + $0x70] sm:$0xff] %vm926_vm3, %v835_v58  ;;  %s1882_s16 = scalar_lea.hbm %s1928_s5, %s1165_s9  ;;  %p1465_p9 = pnand %p1464_p8, %p1458_p3 }
 0x1e8   : > { %899 = vxpose.xlu0.b32.cont [7/16] (narrow) %v642_v41, 8 }
 0x1ec   : > { %900 = vxpose.xlu0.b32.cont [8/16] (narrow) %v1290_v39, 8 }
 0x1f0   : > { %901 = vxpose.xlu0.b32.cont [9/16] (narrow) %v652_v45, 8 }
 0x1f4   : > { %902 = vxpose.xlu0.b32.cont [10/16] (narrow) %v1293_v43, 8 }
 0x1f8   : > { %903 = vxpose.xlu0.b32.cont [11/16] (narrow) %v662_v49, 8 }
 0x1fc   : > { %904 = vxpose.xlu0.b32.cont [12/16] (narrow) %v1296_v47, 8 }
 0x200   : > { %905 = vxpose.xlu0.b32.cont [13/16] (narrow) %v672_v53, 8 }
 0x204   : > { %906 = vxpose.xlu0.b32.cont [14/16] (narrow) %v1299_v51, 8 }
 0x208   : > { %907 = vxpose.xlu0.b32.cont [15/16] (narrow) %v682_v57, 8 }
 0x20c   : > { %908 = vxpose.xlu0.b32.end [16/16] (narrow) %v1302_v55, 8 }
 0x250   : > { %v909_v59 = vpop.trf.xlu0 }
 0x251   : > { %925 = vst [vmem:[%s256_s19] sm:$0xff] %v909_v59 }
 0x252   : > { %1468 = shalt.err (!%p1465_p9)
}
 0x253   : > { %s1469_s10 = scalar_lea.hbm %s1882_s16, 128  ;;  %s1473_s29 = scalar_lea.hbm %s1928_s5, 256 }
 0x254   : > { %p1470_p10 = scmp.ne.s32.totalorder %s1882_s16, %s1469_s10  ;;  %p1474_p13 = scmp.lt.u32.totalorder %s1882_s16, %s1928_s5 }
 0x255   : > { %p1475_p0 = scmp.lt.u32.totalorder %s1473_s29, %s1469_s10  ;;  %p1477_p2 = scmp.lt.u32.totalorder %s1469_s10, %s1882_s16 }
 0x256   : > { %p1471_p11 = pnand %p1470_p10, %p1600_p5 }
 0x257   : > { %p1476_p1 = por %p1475_p0, %p1474_p13 }
 0x258   : > { %p1472_p12 = pneg %p1471_p11 }
 0x259   : > { %p1478_p3 = por %p1477_p2, %p1476_p1 }
 0x25b   : > { %p1479_p4 = pnand %p1478_p3, %p1472_p12 }
 0x25d   : > { %1482 = shalt.err (!%p1479_p4)
}
 0x25e   : > { %1382 = dma.vmem_to_hbm [thread:$0]  (%p1600_p5), %s1877_s20, 128, %s1882_s16, %s949_s14  }
 0x25f PF: > { %p1392_p7 = scmp.ge.s32.totalorder %s1521_s24, 2  ;;  %s999_s9 = sand.u32 1, %s1509_s21  }
 0x260   : > { %s1000_s11 = scalar_lea.sflag [#allocation3], %s999_s9 }
 0x261   : > { %p1386_p8 = pnand %p1392_p7, %p1604_p6 }
 0x263   : > { %1500 = dma.done.wait (!%p1386_p8), %s1000_s11, 2048  }
 0x264   : > { %1502 = vsyncadd (!%p1386_p8), %s1000_s11, 4294965248  ;;  %s1009_s12 = scalar_lea.sflag [#allocation5], %s999_s9 }
 0x265   : > { %1504 = dma.done.wait (!%p1386_p8), %s1009_s12, 128  }
 0x266   : > { %1506 = vsyncadd (!%p1386_p8), %s1009_s12, 4294967168  ;;  %p20_p5 = scmp.ge.s32.totalorder %s1587_s27, 4   ;;  %s1932_s21 = smov %s1513_s22 }
 0x267   : > { %s1933_s22 = smov %s1517_s23  ;;  %s1934_s23 = smov %s1598_s30 }
 0x268   : > { %s1935_s24 = smov %s1587_s27  ;;  %22 = sbr.rel (!%p20_p5) target bundleno = 5 (0x5), region = 100 }
 0x26f   :  { %1022 = vsyncpa [#allocation3], 1 }
 0x270   :  { %1024 = vsyncpa [#allocation3 + $0x1], 1 }
 0x271   :  { %1025 = vsyncpa [#allocation5], 1 }
 0x272   :  { %1027 = vsyncpa [#allocation5 + $0x1], 1 }

</bundles_post_ra>
